<compile_context>
chip_gen: v6e
topology: v6e:2x2x1
jax: 0.10.0
libtpu: 0.0.40
codegen_flags: <defaults>
</compile_context>

<pallas_src>
import functools

import jax
import jax.numpy as jnp
from jax.experimental import pallas as pl
from jax.experimental.pallas import tpu as pltpu


def mlp_kernel(x_ref, w1_ref, b1_ref, w2_ref, b2_ref, w3_ref, b3_ref, o_ref):
    # fc1 + relu  (bf16 operands -> f32 accumulation on the MXU)
    h = jnp.dot(x_ref[...], w1_ref[...], preferred_element_type=jnp.float32)
    h = jnp.maximum(h + b1_ref[...], 0.0)
    # fc2 + relu
    h = jnp.dot(h.astype(jnp.bfloat16), w2_ref[...],
                preferred_element_type=jnp.float32)
    h = jnp.maximum(h + b2_ref[...], 0.0)
    # fc3 (no activation); lane-dense (128-padded) store
    o = jnp.dot(h.astype(jnp.bfloat16), w3_ref[...],
                preferred_element_type=jnp.float32)
    o_ref[...] = (o + b3_ref[...]).astype(o_ref.dtype)


@functools.partial(jax.jit, static_argnames=("batch_tile",))
def simple_nn_forward(x, params, *, batch_tile=256):
    """x: [B, input_size] float32. params: dict of w1,b1,w2,b2,w3,b3 (f32)."""
    w1, b1, w2, b2, w3, b3 = (params["w1"], params["b1"], params["w2"],
                              params["b2"], params["w3"], params["b3"])
    B, in_size = x.shape
    hidden = w1.shape[1]
    out_size = w3.shape[1]

    # --- lane-dense output: pad out_size up to a multiple of 128 -------------
    out_pad = ((out_size + 127) // 128) * 128
    if out_pad != out_size:
        w3p = jnp.zeros((hidden, out_pad), w3.dtype).at[:, :out_size].set(w3)
        b3p = jnp.zeros((1, out_pad), b3.dtype).at[:, :out_size].set(b3)
    else:
        w3p, b3p = w3, b3

    # --- batch tiling: pad B up to a multiple of the batch tile --------------
    TB = batch_tile
    n_tiles = pl.cdiv(B, TB)
    B_pad = n_tiles * TB
    xp = x if B_pad == B else jnp.zeros((B_pad, in_size), x.dtype).at[:B].set(x)

    # bf16 MXU operands (2x MXU throughput, half the x-tile DMA bytes);
    # biases and accumulation stay f32.
    xb = xp.astype(jnp.bfloat16)
    w1b = w1.astype(jnp.bfloat16)
    w2b = w2.astype(jnp.bfloat16)
    w3b = w3p.astype(jnp.bfloat16)

    flops = 2 * B_pad * (in_size * hidden + hidden * hidden + hidden * out_pad)
    bytes_accessed = (xb.size * 2 + w1b.size * 2 + w2b.size * 2 + w3b.size * 2
                      + b1.size * 4 + b2.size * 4 + b3p.size * 4
                      + B_pad * out_pad * 4)

    def resident(shape):
        # whole-array block, same (0,0,...) block every grid step -> stays in VMEM
        return pl.BlockSpec(shape, lambda i: tuple(0 for _ in shape))

    out = pl.pallas_call(
        mlp_kernel,
        out_shape=jax.ShapeDtypeStruct((B_pad, out_pad), jnp.float32),
        grid=(n_tiles,),
        in_specs=[
            pl.BlockSpec((TB, in_size), lambda i: (i, 0)),   # x: batch-tiled
            resident(w1b.shape), resident(b1.shape),
            resident(w2b.shape), resident(b2.shape),
            resident(w3b.shape), resident(b3p.shape),
        ],
        out_specs=pl.BlockSpec((TB, out_pad), lambda i: (i, 0)),
        compiler_params=pltpu.CompilerParams(
            dimension_semantics=("parallel",)),
        cost_estimate=pl.CostEstimate(flops=flops, transcendentals=0,
                                      bytes_accessed=bytes_accessed),
    )(xb, w1b, b1, w2b, b2, w3b, b3p)

    return out[:B, :out_size]


def init_params(key, input_size, output_size, hidden=128):
    """Deterministic parameter init (PyTorch-like uniform fan-in scaling)."""
    ks = jax.random.split(key, 6)

    def linear(kw, kb, fan_in, fan_out):
        bound = 1.0 / jnp.sqrt(fan_in)
        w = jax.random.uniform(kw, (fan_in, fan_out), jnp.float32, -bound, bound)
        b = jax.random.uniform(kb, (1, fan_out), jnp.float32, -bound, bound)
        return w, b

    w1, b1 = linear(ks[0], ks[1], input_size, hidden)
    w2, b2 = linear(ks[2], ks[3], hidden, hidden)
    w3, b3 = linear(ks[4], ks[5], hidden, output_size)
    return {"w1": w1, "b1": b1, "w2": w2, "b2": b2, "w3": w3, "b3": b3}


def reference_forward(x, p):
    h = jnp.maximum(x @ p["w1"] + p["b1"], 0.0)
    h = jnp.maximum(h @ p["w2"] + p["b2"], 0.0)
    return h @ p["w3"] + p["b3"]


if __name__ == "__main__":
    input_size = 32
    output_size = 16
    batch = 8

    key = jax.random.PRNGKey(0)
    k_x, k_p = jax.random.split(key)
    x = jax.random.normal(k_x, (batch, input_size), jnp.float32)
    params = init_params(k_p, input_size, output_size)

    out = simple_nn_forward(x, params)
    out = jax.block_until_ready(out)

    ref = reference_forward(x, params)
    assert out.shape == (batch, output_size)
    # bf16 MXU operands with f32 accumulation -> loose-but-tight-enough tolerance
    assert jnp.allclose(out, ref, atol=3e-2, rtol=3e-2)

    print("KERNEL_OK")
</pallas_src>

<mosaic_0001>
module attributes {stable_mosaic.version = 11 : i64} {
  func.func @mlp_kernel(%arg0: i32, %arg1: memref<256x32xbf16, #tpu.memory_space<vmem>>, %arg2: memref<32x128xbf16, #tpu.memory_space<vmem>>, %arg3: memref<1x128xf32, #tpu.memory_space<vmem>>, %arg4: memref<128x128xbf16, #tpu.memory_space<vmem>>, %arg5: memref<1x128xf32, #tpu.memory_space<vmem>>, %arg6: memref<128x128xbf16, #tpu.memory_space<vmem>>, %arg7: memref<1x128xf32, #tpu.memory_space<vmem>>, %arg8: memref<256x128xf32, #tpu.memory_space<vmem>>) attributes {dimension_semantics = [#tpu.dimension_semantics<parallel>], iteration_bounds = array<i64: 1>, scalar_prefetch = 0 : i64, scratch_operands = 0 : i64, tpu.core_type = #tpu.core_type<tc>, window_params = [{transform_indices = @transform_0, window_bounds = array<i64: 256, 32>}, {pipeline_mode = #tpu.pipeline_mode<synchronous>, transform_indices = @transform_1, window_bounds = array<i64: 32, 128>}, {pipeline_mode = #tpu.pipeline_mode<synchronous>, transform_indices = @transform_2, window_bounds = array<i64: 1, 128>}, {pipeline_mode = #tpu.pipeline_mode<synchronous>, transform_indices = @transform_3, window_bounds = array<i64: 128, 128>}, {pipeline_mode = #tpu.pipeline_mode<synchronous>, transform_indices = @transform_4, window_bounds = array<i64: 1, 128>}, {pipeline_mode = #tpu.pipeline_mode<synchronous>, transform_indices = @transform_5, window_bounds = array<i64: 128, 128>}, {pipeline_mode = #tpu.pipeline_mode<synchronous>, transform_indices = @transform_6, window_bounds = array<i64: 1, 128>}, {transform_indices = @transform_7, window_bounds = array<i64: 256, 128>}]} {
    %c0 = arith.constant 0 : index
    %c0_0 = arith.constant 0 : index
    %0 = vector.load %arg1[%c0, %c0_0] : memref<256x32xbf16, #tpu.memory_space<vmem>>, vector<256x32xbf16>
    %c0_1 = arith.constant 0 : index
    %c0_2 = arith.constant 0 : index
    %1 = vector.load %arg2[%c0_1, %c0_2] : memref<32x128xbf16, #tpu.memory_space<vmem>>, vector<32x128xbf16>
    %cst = arith.constant dense<0.000000e+00> : vector<256x128xf32>
    %2 = tpu.matmul %0, %1, %cst {dimension_numbers = #tpu.dot_dimension_numbers<[1], [0], [0], [1], [0, 0, 1, 1], [], []>} : vector<256x32xbf16>, vector<32x128xbf16>, vector<256x128xf32> -> vector<256x128xf32>
    %c0_3 = arith.constant 0 : index
    %c0_4 = arith.constant 0 : index
    %3 = vector.load %arg3[%c0_3, %c0_4] : memref<1x128xf32, #tpu.memory_space<vmem>>, vector<1x128xf32>
    %4 = vector.broadcast %3 : vector<1x128xf32> to vector<256x128xf32>
    %5 = arith.addf %2, %4 : vector<256x128xf32>
    %cst_5 = arith.constant 0.000000e+00 : f32
    %6 = vector.broadcast %cst_5 : f32 to vector<256x128xf32>
    %7 = arith.maximumf %5, %6 : vector<256x128xf32>
    %8 = arith.truncf %7 : vector<256x128xf32> to vector<256x128xbf16>
    %c0_6 = arith.constant 0 : index
    %c0_7 = arith.constant 0 : index
    %9 = vector.load %arg4[%c0_6, %c0_7] : memref<128x128xbf16, #tpu.memory_space<vmem>>, vector<128x128xbf16>
    %cst_8 = arith.constant dense<0.000000e+00> : vector<256x128xf32>
    %10 = tpu.matmul %8, %9, %cst_8 {dimension_numbers = #tpu.dot_dimension_numbers<[1], [0], [0], [1], [0, 0, 1, 1], [], []>} : vector<256x128xbf16>, vector<128x128xbf16>, vector<256x128xf32> -> vector<256x128xf32>
    %c0_9 = arith.constant 0 : index
    %c0_10 = arith.constant 0 : index
    %11 = vector.load %arg5[%c0_9, %c0_10] : memref<1x128xf32, #tpu.memory_space<vmem>>, vector<1x128xf32>
    %12 = vector.broadcast %11 : vector<1x128xf32> to vector<256x128xf32>
    %13 = arith.addf %10, %12 : vector<256x128xf32>
    %cst_11 = arith.constant 0.000000e+00 : f32
    %14 = vector.broadcast %cst_11 : f32 to vector<256x128xf32>
    %15 = arith.maximumf %13, %14 : vector<256x128xf32>
    %16 = arith.truncf %15 : vector<256x128xf32> to vector<256x128xbf16>
    %c0_12 = arith.constant 0 : index
    %c0_13 = arith.constant 0 : index
    %17 = vector.load %arg6[%c0_12, %c0_13] : memref<128x128xbf16, #tpu.memory_space<vmem>>, vector<128x128xbf16>
    %cst_14 = arith.constant dense<0.000000e+00> : vector<256x128xf32>
    %18 = tpu.matmul %16, %17, %cst_14 {dimension_numbers = #tpu.dot_dimension_numbers<[1], [0], [0], [1], [0, 0, 1, 1], [], []>} : vector<256x128xbf16>, vector<128x128xbf16>, vector<256x128xf32> -> vector<256x128xf32>
    %c0_15 = arith.constant 0 : index
    %c0_16 = arith.constant 0 : index
    %19 = vector.load %arg7[%c0_15, %c0_16] : memref<1x128xf32, #tpu.memory_space<vmem>>, vector<1x128xf32>
    %20 = vector.broadcast %19 : vector<1x128xf32> to vector<256x128xf32>
    %21 = arith.addf %18, %20 : vector<256x128xf32>
    %c0_17 = arith.constant 0 : index
    %c0_18 = arith.constant 0 : index
    %22 = vector.load %arg8[%c0_17, %c0_18] : memref<256x128xf32, #tpu.memory_space<vmem>>, vector<256x128xf32>
    tpu.vector_store %arg8[%c0_17, %c0_18], %21 {strides = array<i32>} : memref<256x128xf32, #tpu.memory_space<vmem>>, vector<256x128xf32>,
    return
  }
  func.func @transform_0(%arg0: i32) -> (i32, i32) {
    %c0_i32 = arith.constant 0 : i32
    %c0_i32_0 = arith.constant 0 : i32
    return %arg0, %c0_i32 : i32, i32
  }
  func.func @transform_1(%arg0: i32) -> (i32, i32) {
    %c0_i32 = arith.constant 0 : i32
    %c0_i32_0 = arith.constant 0 : i32
    %c0_i32_1 = arith.constant 0 : i32
    return %c0_i32, %c0_i32_0 : i32, i32
  }
  func.func @transform_2(%arg0: i32) -> (i32, i32) {
    %c0_i32 = arith.constant 0 : i32
    %c0_i32_0 = arith.constant 0 : i32
    %c0_i32_1 = arith.constant 0 : i32
    return %c0_i32, %c0_i32_0 : i32, i32
  }
  func.func @transform_3(%arg0: i32) -> (i32, i32) {
    %c0_i32 = arith.constant 0 : i32
    %c0_i32_0 = arith.constant 0 : i32
    %c0_i32_1 = arith.constant 0 : i32
    return %c0_i32, %c0_i32_0 : i32, i32
  }
  func.func @transform_4(%arg0: i32) -> (i32, i32) {
    %c0_i32 = arith.constant 0 : i32
    %c0_i32_0 = arith.constant 0 : i32
    %c0_i32_1 = arith.constant 0 : i32
    return %c0_i32, %c0_i32_0 : i32, i32
  }
  func.func @transform_5(%arg0: i32) -> (i32, i32) {
    %c0_i32 = arith.constant 0 : i32
    %c0_i32_0 = arith.constant 0 : i32
    %c0_i32_1 = arith.constant 0 : i32
    return %c0_i32, %c0_i32_0 : i32, i32
  }
  func.func @transform_6(%arg0: i32) -> (i32, i32) {
    %c0_i32 = arith.constant 0 : i32
    %c0_i32_0 = arith.constant 0 : i32
    %c0_i32_1 = arith.constant 0 : i32
    return %c0_i32, %c0_i32_0 : i32, i32
  }
  func.func @transform_7(%arg0: i32) -> (i32, i32) {
    %c0_i32 = arith.constant 0 : i32
    %c0_i32_0 = arith.constant 0 : i32
    return %arg0, %c0_i32 : i32, i32
  }
}

</mosaic_0001>

<bundles_post_ra>
// kernel: simple_nn_forward.1
= control target key start
LH: loop header
LB: loop body
LE: loop exit
PB: predicated region body
PF: predicated region fallthrough
CT: control target
= control target key end

     0   :  { %vm162_vm0 = vcmask 261120   ;;  %s1637_s1 = inlined_call_operand.vmem [shape: bf16[32,128], index: 1, kind: input, shape index: {}]   ;;  %s1638_s0 = inlined_call_operand.vmem [shape: bf16[256,32], index: 0, kind: input, shape index: {}]   ;;  %s1639_s3 = inlined_call_operand.vmem [shape: bf16[128,128], index: 3, kind: input, shape index: {}]   ;;  %s1640_s5 = inlined_call_operand.vmem [shape: bf16[128,128], index: 5, kind: input, shape index: {}]   ;;  %s1641_s2 = inlined_call_operand.vmem [shape: f32[1,128], index: 2, kind: input, shape index: {}]   ;;  %s1642_s4 = inlined_call_operand.vmem [shape: f32[1,128], index: 4, kind: input, shape index: {}]   ;;  %s1643_s6 = inlined_call_operand.vmem [shape: f32[1,128], index: 6, kind: input, shape index: {}]   ;;  %s1644_s7 = inlined_call_operand.vmem [shape: f32[256,128], index: 7, kind: output, shape index: {}]  }
   0x1   :  { %v1223_v0 = vld [vmem:[%s1637_s1 + $0x8] sm:$0xff]   ;;  %v1224_v1 = vld [vmem:[%s1637_s1] sm:$0xff]   ;;  %v1227_v4 = vld [vmem:[%s1638_s0 + $0x10] sm:$0xff]  }
   0x2   :  { %1087 = vmatprep.subr.bf16.mxu0 %v1223_v0  ;;  %v1225_v2 = vld [vmem:[%s1638_s0] sm:$0xff]   ;;  %1219 = vmatprep.subr.bf16.mxu1 %v1223_v0  ;;  %v1226_v3 = vld [vmem:[%s1638_s0 + $0x8] sm:$0xff]   ;;  %v1235_v7 = vld [vmem:[%s1638_s0 + $0x50] sm:$0xff]  }
   0x3   :  { %1088 = vmatpush3.bf16.msra.mxu0 %v1223_v0  ;;  %1221 = vmatpush3.bf16.msra.mxu1 %v1223_v0  ;;  %v1233_v5 = vld [vmem:[%s1638_s0 + $0x40] sm:$0xff]   ;;  %v1234_v6 = vld [vmem:[%s1638_s0 + $0x48] sm:$0xff]   ;;  %v1228_v8 = vld [vmem:[%s1638_s0 + $0x18] sm:$0xff]  }
   0x4   :  { %1089 = vmatprep.subr.bf16.mxu0 %v1224_v1  ;;  %1091 = vmatprep.mubr.msk.bf16.mxu0 %vm162_vm0, %v1225_v2  ;;  %v1229_v9 = vld [vmem:[%s1638_s0 + $0x20] sm:$0xff]   ;;  %v1236_v10 = vld [vmem:[%s1638_s0 + $0x58] sm:$0xff]   ;;  %v1242_v13 = vld [vmem:[%s1639_s3 + $0x30] sm:$0xff]  }
   0x5   :  { %1220 = vmatprep.subr.bf16.mxu1 %v1224_v1  ;;  %1107 = vmatprep.mubr.msk.bf16.mxu1 %vm162_vm0, %v1233_v5  ;;  %v1237_v11 = vld [vmem:[%s1638_s0 + $0x60] sm:$0xff]   ;;  %v1241_v12 = vld [vmem:[%s1639_s3 + $0x38] sm:$0xff]   ;;  %v1230_v14 = vld [vmem:[%s1638_s0 + $0x28] sm:$0xff]  }
   0x6   :  { %v1231_v15 = vld [vmem:[%s1638_s0 + $0x30] sm:$0xff]   ;;  %v1243_v16 = vld [vmem:[%s1639_s3 + $0x28] sm:$0xff]   ;;  %v1244_v19 = vld [vmem:[%s1639_s3 + $0x20] sm:$0xff]  }
   0x7   :  { %1090 = vmatpush3.bf16.msra.mxu0 %v1224_v1  ;;  %1222 = vmatpush3.bf16.msra.mxu1 %v1224_v1  ;;  %v1238_v17 = vld [vmem:[%s1638_s0 + $0x68] sm:$0xff]   ;;  %v1239_v18 = vld [vmem:[%s1638_s0 + $0x70] sm:$0xff]   ;;  %v1232_v20 = vld [vmem:[%s1638_s0 + $0x38] sm:$0xff]  }
   0x8   :  { %1123 = vmatprep.subr.bf16.mxu1 %v1241_v12  ;;  %v1245_v21 = vld [vmem:[%s1639_s3 + $0x18] sm:$0xff]   ;;  %v1246_v23 = vld [vmem:[%s1639_s3 + $0x10] sm:$0xff]   ;;  %v1247_v24 = vld [vmem:[%s1639_s3 + $0x8] sm:$0xff]  }
   0x9   :  { %v1240_v22 = vld [vmem:[%s1638_s0 + $0x78] sm:$0xff]   ;;  %v1248_v25 = vld [vmem:[%s1639_s3] sm:$0xff]   ;;  %v1250_v27 = vld [vmem:[%s1640_s5 + $0x30] sm:$0xff]  }
   0xa   :  { %1092 = vmatmul.mubr.msk.bf16.vlgmr.msra.gmra.mxu0 %vm162_vm0, %v1226_v3  ;;  %1108 = vmatmul.mubr.msk.bf16.vlgmr.msra.gmra.mxu1 %vm162_vm0, %v1234_v6  ;;  %v1249_v26 = vld [vmem:[%s1640_s5 + $0x38] sm:$0xff]   ;;  %v1251_v28 = vld [vmem:[%s1640_s5 + $0x28] sm:$0xff]   ;;  %v1252_v29 = vld [vmem:[%s1640_s5 + $0x20] sm:$0xff]  }
   0xb   :  { %1095 = vmatprep.mubr.msk.bf16.mxu0 %vm162_vm0, %v1227_v4  ;;  %1111 = vmatprep.mubr.msk.bf16.mxu1 %vm162_vm0, %v1235_v7  ;;  %v1253_v30 = vld [vmem:[%s1640_s5 + $0x18] sm:$0xff]   ;;  %v1409_v33 = vld [vmem:[%s1641_s2] ss:$0 sm:$0xff] }
   0xc   :  { %1124 = vmatpush3.bf16.msra.mxu1 %v1241_v12  ;;  %1171 = vmatprep.subr.bf16.mxu0 %v1249_v26 }
   0xd   :  { %1125 = vmatprep.subr.bf16.mxu1 %v1242_v13  ;;  %1172 = vmatpush3.bf16.msra.mxu0 %v1249_v26 }
   0xe   :  { %1173 = vmatprep.subr.bf16.mxu0 %v1250_v27 }
  0x10   :  { %1126 = vmatpush3.bf16.msra.mxu1 %v1242_v13 }
  0x11   :  { %1127 = vmatprep.subr.bf16.mxu1 %v1243_v16  ;;  %1174 = vmatpush3.bf16.msra.mxu0 %v1250_v27 }
  0x12   :  { %1096 = vmatmul.mubr.msk.bf16.gmra.mxu0 %vm162_vm0, %v1228_v8  ;;  %1112 = vmatmul.mubr.msk.bf16.gmra.mxu1 %vm162_vm0, %v1236_v10 }
  0x13   :  { %1099 = vmatprep.mubr.msk.bf16.mxu0 %vm162_vm0, %v1229_v9  ;;  %1115 = vmatprep.mubr.msk.bf16.mxu1 %vm162_vm0, %v1237_v11 }
  0x14   :  { %1128 = vmatpush3.bf16.msra.mxu1 %v1243_v16  ;;  %1175 = vmatprep.subr.bf16.mxu0 %v1251_v28 }
  0x15   :  { %1129 = vmatprep.subr.bf16.mxu1 %v1244_v19  ;;  %1176 = vmatpush3.bf16.msra.mxu0 %v1251_v28 }
  0x16   :  { %1177 = vmatprep.subr.bf16.mxu0 %v1252_v29 }
  0x18   :  { %1130 = vmatpush3.bf16.msra.mxu1 %v1244_v19 }
  0x19   :  { %1131 = vmatprep.subr.bf16.mxu1 %v1245_v21  ;;  %1178 = vmatpush3.bf16.msra.mxu0 %v1252_v29 }
  0x1a   :  { %1100 = vmatmul.mubr.msk.bf16.gmra.mxu0 %vm162_vm0, %v1230_v14  ;;  %1116 = vmatmul.mubr.msk.bf16.gmra.mxu1 %vm162_vm0, %v1238_v17 }
  0x1b   :  { %1103 = vmatprep.mubr.msk.bf16.mxu0 %vm162_vm0, %v1231_v15  ;;  %1119 = vmatprep.mubr.msk.bf16.mxu1 %vm162_vm0, %v1239_v18 }
  0x1c   :  { %1132 = vmatpush3.bf16.msra.mxu1 %v1245_v21  ;;  %1179 = vmatprep.subr.bf16.mxu0 %v1253_v30 }
  0x1d   :  { %1133 = vmatprep.subr.bf16.mxu1 %v1246_v23  ;;  %1180 = vmatpush3.bf16.msra.mxu0 %v1253_v30 }
  0x20   :  { %1134 = vmatpush3.bf16.msra.mxu1 %v1246_v23 }
  0x21   :  { %1135 = vmatprep.subr.bf16.mxu1 %v1247_v24 }
  0x22   :  { %1104 = vmatmul.mubr.msk.bf16.gmra.mxu0 %vm162_vm0, %v1232_v20  ;;  %1120 = vmatmul.mubr.msk.bf16.gmra.mxu1 %vm162_vm0, %v1240_v22 }
  0x24   :  { %1136 = vmatpush3.bf16.msra.mxu1 %v1247_v24 }
  0x25   :  { %1137 = vmatprep.subr.bf16.mxu1 %v1248_v25 }
  0x28   :  { %1138 = vmatpush3.bf16.msra.mxu1 %v1248_v25 }
  0xca   :  { %v1093_v31 = vpop.f32.mrf.mxu0  ;;  %v1411_v34 = vpop.f32.mrf.mxu1 }
  0xcb   :  { %v254_v39 = vadd.f32 %v1093_v31, %v1409_v33 }
  0xcc   :  { %v245_v32 = vpop.f32.mrf.mxu0  ;;  %v309_v38 = vpop.f32.mrf.mxu1 }
  0xcd   :  { %v246_v36 = vadd.f32 %v1409_v33, %v245_v32  ;;  %v374_v48 = vmax.f32 %v254_v39, 0.0  ;;  %v310_v21 = vadd.f32 %v1409_v33, %v309_v38 }
  0xce   :  { %v1094_v35 = vpop.f32.mrf.mxu0  ;;  %v1417_v42 = vpop.f32.mrf.mxu1 }
  0xcf   :  { %v257_v37 = vadd.f32 %v1094_v35, %v1409_v33  ;;  %v372_v45 = vmax.f32 %v246_v36, 0.0  ;;  %v388_v30 = vmax.f32 %v310_v21, 0.0  ;;  %v1470_v21 = vld [vmem:[%s1642_s4] ss:$0 sm:$0xff] }
  0xd0   :  { %v248_v40 = vpop.f32.mrf.mxu0  ;;  %v312_v47 = vpop.f32.mrf.mxu1 }
  0xd1   :  { %v249_v41 = vadd.f32 %v1409_v33, %v248_v40  ;;  %v375_v43 = vmax.f32 %v257_v37, 0.0  ;;  %v313_v22 = vadd.f32 %v1409_v33, %v312_v47  ;;  %v321_v47 = vadd.f32 %v1417_v42, %v1409_v33 }
  0xd2   :  { %v1097_v44 = vpop.f32.mrf.mxu0  ;;  %v1419_v51 = vpop.f32.mrf.mxu1 }
  0xd3   :  { %v373_v46 = vmax.f32 %v249_v41, 0.0  ;;  %v405_v52 = vpack.c.bf16 %v375_v43, %v374_v48  ;;  %v270_v57 = vadd.f32 %v1097_v44, %v1409_v33  ;;  %v389_v32 = vmax.f32 %v313_v22, 0.0 }
  0xd4   :  { %v261_v49 = vpop.f32.mrf.mxu0  ;;  %v325_v56 = vpop.f32.mrf.mxu1 }
  0xd5   :  { %v404_v50 = vpack.c.bf16 %v373_v46, %v372_v45  ;;  %v262_v54 = vadd.f32 %v1409_v33, %v261_v49  ;;  %v378_v2 = vmax.f32 %v270_v57, 0.0  ;;  %v412_v41 = vpack.c.bf16 %v389_v32, %v388_v30 }
  0xd6   :  { %v1098_v53 = vpop.f32.mrf.mxu0  ;;  %v1425_v60 = vpop.f32.mrf.mxu1  ;;  %v326_v43 = vadd.f32 %v1409_v33, %v325_v56  ;;  %v318_v45 = vadd.f32 %v1411_v34, %v1409_v33  ;;  %v334_v34 = vadd.f32 %v1419_v51, %v1409_v33 }
  0xd7   :  { %v273_v55 = vadd.f32 %v1098_v53, %v1409_v33  ;;  %1139 = vmatprep.mubr.bf16.mxu1 %v404_v50  ;;  %v376_v63 = vmax.f32 %v262_v54, 0.0  ;;  %v391_v53 = vmax.f32 %v321_v47, 0.0  ;;  %v337_v42 = vadd.f32 %v1425_v60, %v1409_v33 }
  0xd8   :  { %v264_v58 = vpop.f32.mrf.mxu0  ;;  %1140 = vmatmul.mubr.bf16.vlgmr.msra.gmra.mxu1 %v405_v52  ;;  %v328_v1 = vpop.f32.mrf.mxu1  ;;  %v392_v49 = vmax.f32 %v326_v43, 0.0  ;;  %v390_v52 = vmax.f32 %v318_v45, 0.0 }
  0xd9   :  { %v265_v59 = vadd.f32 %v1409_v33, %v264_v58  ;;  %v379_v61 = vmax.f32 %v273_v55, 0.0  ;;  %v329_v44 = vadd.f32 %v1409_v33, %v328_v1 }
  0xda   :  { %v1101_v62 = vpop.f32.mrf.mxu0  ;;  %v1427_v7 = vpop.f32.mrf.mxu1  ;;  %v413_v58 = vpack.c.bf16 %v391_v53, %v390_v52 }
  0xdb   :  { %v377_v0 = vmax.f32 %v265_v59, 0.0  ;;  %v407_v5 = vpack.c.bf16 %v379_v61, %v378_v2  ;;  %v286_v10 = vadd.f32 %v1101_v62, %v1409_v33  ;;  %v393_v50 = vmax.f32 %v329_v44, 0.0 }
  0xdc   :  { %v277_v3 = vpop.f32.mrf.mxu0  ;;  %v341_v15 = vpop.f32.mrf.mxu1  ;;  %v350_v51 = vadd.f32 %v1427_v7, %v1409_v33  ;;  %v1254_v7 = vld [vmem:[%s1640_s5 + $0x10] sm:$0xff]  }
  0xdd   :  { %v406_v4 = vpack.c.bf16 %v377_v0, %v376_v63  ;;  %v278_v8 = vadd.f32 %v1409_v33, %v277_v3  ;;  %v382_v18 = vmax.f32 %v286_v10, 0.0  ;;  %v414_v55 = vpack.c.bf16 %v393_v50, %v392_v49  ;;  %1181 = vmatprep.subr.bf16.mxu0 %v1254_v7 }
  0xde   :  { %v1102_v6 = vpop.f32.mrf.mxu0  ;;  %v1118_v25 = vpop.f32.mrf.mxu1  ;;  %v342_v56 = vadd.f32 %v1409_v33, %v341_v15  ;;  %v394_v63 = vmax.f32 %v334_v34, 0.0  ;;  %v395_v0 = vmax.f32 %v337_v42, 0.0  ;;  %1182 = vmatpush3.bf16.msra.mxu0 %v1254_v7 }
  0xdf   :  { %v289_v9 = vadd.f32 %v1102_v6, %v1409_v33  ;;  %1143 = vmatprep.mubr.bf16.mxu1 %v406_v4  ;;  %v380_v16 = vmax.f32 %v278_v8, 0.0  ;;  %v353_v6 = vadd.f32 %v1118_v25, %v1409_v33 }
  0xe0   :  { %v280_v11 = vpop.f32.mrf.mxu0  ;;  %1144 = vmatmul.mubr.bf16.gmra.mxu1 %v407_v5  ;;  %v344_v36 = vpop.f32.mrf.mxu1  ;;  %v396_v61 = vmax.f32 %v342_v56, 0.0  ;;  %v415_v5 = vpack.c.bf16 %v395_v0, %v394_v63 }
  0xe1   :  { %v281_v12 = vadd.f32 %v1409_v33, %v280_v11  ;;  %v383_v13 = vmax.f32 %v289_v9, 0.0  ;;  %v345_v57 = vadd.f32 %v1409_v33, %v344_v36  ;;  %v398_v9 = vmax.f32 %v350_v51, 0.0 }
  0xe2   :  { %v1105_v14 = vpop.f32.mrf.mxu0  ;;  %v1121_v48 = vpop.f32.mrf.mxu1  ;;  %v399_v10 = vmax.f32 %v353_v6, 0.0 }
  0xe3   :  { %v381_v17 = vmax.f32 %v281_v12, 0.0  ;;  %v409_v23 = vpack.c.bf16 %v383_v13, %v382_v18  ;;  %v302_v28 = vadd.f32 %v1105_v14, %v1409_v33  ;;  %v397_v62 = vmax.f32 %v345_v57, 0.0  ;;  %v1255_v18 = vld [vmem:[%s1640_s5 + $0x8] sm:$0xff]  }
  0xe4   :  { %v293_v19 = vpop.f32.mrf.mxu0  ;;  %v357_v54 = vpop.f32.mrf.mxu1  ;;  %v417_v12 = vpack.c.bf16 %v399_v10, %v398_v9  ;;  %v366_v13 = vadd.f32 %v1121_v48, %v1409_v33  ;;  %1183 = vmatprep.subr.bf16.mxu0 %v1255_v18 }
  0xe5   :  { %v408_v20 = vpack.c.bf16 %v381_v17, %v380_v16  ;;  %v294_v26 = vadd.f32 %v1409_v33, %v293_v19  ;;  %v386_v39 = vmax.f32 %v302_v28, 0.0  ;;  %v416_v2 = vpack.c.bf16 %v397_v62, %v396_v61  ;;  %1184 = vmatpush3.bf16.msra.mxu0 %v1255_v18 }
  0xe6   :  { %v1106_v24 = vpop.f32.mrf.mxu0  ;;  %v1122_v59 = vpop.f32.mrf.mxu1  ;;  %v358_v3 = vadd.f32 %v1409_v33, %v357_v54  ;;  %v402_v15 = vmax.f32 %v366_v13, 0.0 }
  0xe7   :  { %v305_v27 = vadd.f32 %v1106_v24, %v1409_v33  ;;  %1147 = vmatprep.mubr.bf16.mxu1 %v408_v20  ;;  %v384_v37 = vmax.f32 %v294_v26, 0.0  ;;  %v369_v14 = vadd.f32 %v1122_v59, %v1409_v33 }
  0xe8   :  { %v296_v29 = vpop.f32.mrf.mxu0  ;;  %1148 = vmatmul.mubr.bf16.gmra.mxu1 %v409_v23  ;;  %v360_v1 = vpop.f32.mrf.mxu1  ;;  %v400_v60 = vmax.f32 %v358_v3, 0.0 }
  0xe9   :  { %v297_v31 = vadd.f32 %v1409_v33, %v296_v29  ;;  %v387_v35 = vmax.f32 %v305_v27, 0.0  ;;  %v361_v4 = vadd.f32 %v1409_v33, %v360_v1  ;;  %v403_v16 = vmax.f32 %v369_v14, 0.0  ;;  %v1256_v33 = vld [vmem:[%s1640_s5] sm:$0xff]  }
  0xea   :  { %1185 = vmatprep.subr.bf16.mxu0 %v1256_v33 }
  0xeb   :  { %v385_v38 = vmax.f32 %v297_v31, 0.0  ;;  %v411_v46 = vpack.c.bf16 %v387_v35, %v386_v39  ;;  %v401_v8 = vmax.f32 %v361_v4, 0.0  ;;  %v419_v17 = vpack.c.bf16 %v403_v16, %v402_v15  ;;  %1186 = vmatpush3.bf16.msra.mxu0 %v1256_v33 }
  0xed   :  { %v410_v40 = vpack.c.bf16 %v385_v38, %v384_v37  ;;  %v418_v11 = vpack.c.bf16 %v401_v8, %v400_v60 }
  0xef   :  { %1151 = vmatprep.mubr.bf16.mxu1 %v410_v40 }
  0xf0   :  { %1152 = vmatmul.mubr.bf16.gmra.mxu1 %v411_v46 }
  0xf1   :  { %1155 = vmatprep.mubr.bf16.mxu1 %v412_v41 }
  0xf8   :  { %1156 = vmatmul.mubr.bf16.gmra.mxu1 %v413_v58 }
  0xf9   :  { %1159 = vmatprep.mubr.bf16.mxu1 %v414_v55 }
 0x100   :  { %1160 = vmatmul.mubr.bf16.gmra.mxu1 %v415_v5 }
 0x101   :  { %1163 = vmatprep.mubr.bf16.mxu1 %v416_v2 }
 0x108   :  { %1164 = vmatmul.mubr.bf16.gmra.mxu1 %v417_v12 }
 0x109   :  { %1167 = vmatprep.mubr.bf16.mxu1 %v418_v11 }
 0x110   :  { %1168 = vmatmul.mubr.bf16.gmra.mxu1 %v419_v17 }
 0x198   :  { %v1141_v19 = vpop.f32.mrf.mxu1 }
 0x199   :  { %v534_v25 = vadd.f32 %v1141_v19, %v1470_v21 }
 0x19a   :  { %v525_v20 = vpop.f32.mrf.mxu1 }
 0x19b   :  { %v526_v23 = vadd.f32 %v1470_v21, %v525_v20  ;;  %v654_v32 = vmax.f32 %v534_v25, 0.0 }
 0x19c   :  { %v1142_v22 = vpop.f32.mrf.mxu1 }
 0x19d   :  { %v537_v24 = vadd.f32 %v1142_v22, %v1470_v21  ;;  %v652_v30 = vmax.f32 %v526_v23, 0.0 }
 0x19e   :  { %v528_v26 = vpop.f32.mrf.mxu1 }
 0x19f   :  { %v529_v27 = vadd.f32 %v1470_v21, %v528_v26  ;;  %v655_v28 = vmax.f32 %v537_v24, 0.0 }
 0x1a0   :  { %v1145_v29 = vpop.f32.mrf.mxu1 }
 0x1a1   :  { %v653_v31 = vmax.f32 %v529_v27, 0.0  ;;  %v685_v37 = vpack.c.bf16 %v655_v28, %v654_v32  ;;  %v550_v41 = vadd.f32 %v1145_v29, %v1470_v21 }
 0x1a2   :  { %v541_v35 = vpop.f32.mrf.mxu1 }
 0x1a3   :  { %v684_v36 = vpack.c.bf16 %v653_v31, %v652_v30  ;;  %v542_v39 = vadd.f32 %v1470_v21, %v541_v35  ;;  %v658_v49 = vmax.f32 %v550_v41, 0.0 }
 0x1a4   :  { %v1146_v38 = vpop.f32.mrf.mxu1 }
 0x1a5   :  { %v553_v40 = vadd.f32 %v1146_v38, %v1470_v21  ;;  %1187 = vmatprep.mubr.bf16.mxu0 %v684_v36  ;;  %v656_v47 = vmax.f32 %v542_v39, 0.0 }
 0x1a6   :  { %v544_v43 = vpop.f32.mrf.mxu1  ;;  %1188 = vmatmul.mubr.bf16.vlgmr.msra.gmra.mxu0 %v685_v37 }
 0x1a7   :  { %v545_v44 = vadd.f32 %v1470_v21, %v544_v43  ;;  %v659_v45 = vmax.f32 %v553_v40, 0.0 }
 0x1a8   :  { %v1149_v46 = vpop.f32.mrf.mxu1 }
 0x1a9   :  { %v657_v48 = vmax.f32 %v545_v44, 0.0  ;;  %v687_v53 = vpack.c.bf16 %v659_v45, %v658_v49  ;;  %v566_v57 = vadd.f32 %v1149_v46, %v1470_v21 }
 0x1aa   :  { %v557_v50 = vpop.f32.mrf.mxu1 }
 0x1ab   :  { %v686_v52 = vpack.c.bf16 %v657_v48, %v656_v47  ;;  %v558_v55 = vadd.f32 %v1470_v21, %v557_v50  ;;  %v662_v63 = vmax.f32 %v566_v57, 0.0 }
 0x1ac   :  { %v1150_v54 = vpop.f32.mrf.mxu1 }
 0x1ad   :  { %v569_v56 = vadd.f32 %v1150_v54, %v1470_v21  ;;  %1191 = vmatprep.mubr.bf16.mxu0 %v686_v52  ;;  %v660_v61 = vmax.f32 %v558_v55, 0.0 }
 0x1ae   :  { %v560_v58 = vpop.f32.mrf.mxu1  ;;  %1192 = vmatmul.mubr.bf16.gmra.mxu0 %v687_v53 }
 0x1af   :  { %v561_v34 = vadd.f32 %v1470_v21, %v560_v58  ;;  %v663_v42 = vmax.f32 %v569_v56, 0.0 }
 0x1b0   :  { %v1153_v59 = vpop.f32.mrf.mxu1 }
 0x1b1   :  { %v661_v62 = vmax.f32 %v561_v34, 0.0  ;;  %v689_v2 = vpack.c.bf16 %v663_v42, %v662_v63  ;;  %v582_v51 = vadd.f32 %v1153_v59, %v1470_v21 }
 0x1b2   :  { %v573_v0 = vpop.f32.mrf.mxu1 }
 0x1b3   :  { %v688_v1 = vpack.c.bf16 %v661_v62, %v660_v61  ;;  %v574_v4 = vadd.f32 %v1470_v21, %v573_v0  ;;  %v666_v12 = vmax.f32 %v582_v51, 0.0 }
 0x1b4   :  { %v1154_v3 = vpop.f32.mrf.mxu1 }
 0x1b5   :  { %v585_v5 = vadd.f32 %v1154_v3, %v1470_v21  ;;  %1195 = vmatprep.mubr.bf16.mxu0 %v688_v1  ;;  %v664_v10 = vmax.f32 %v574_v4, 0.0 }
 0x1b6   :  { %v576_v6 = vpop.f32.mrf.mxu1  ;;  %1196 = vmatmul.mubr.bf16.gmra.mxu0 %v689_v2 }
 0x1b7   :  { %v577_v60 = vadd.f32 %v1470_v21, %v576_v6  ;;  %v667_v8 = vmax.f32 %v585_v5, 0.0 }
 0x1b8   :  { %v1157_v9 = vpop.f32.mrf.mxu1 }
 0x1b9   :  { %v665_v11 = vmax.f32 %v577_v60, 0.0  ;;  %v691_v15 = vpack.c.bf16 %v667_v8, %v666_v12  ;;  %v598_v18 = vadd.f32 %v1157_v9, %v1470_v21  ;;  %v1507_v60 = vld [vmem:[%s1643_s6] ss:$0 sm:$0xff] }
 0x1ba   :  { %v589_v13 = vpop.f32.mrf.mxu1 }
 0x1bb   :  { %v690_v14 = vpack.c.bf16 %v665_v11, %v664_v10  ;;  %v590_v17 = vadd.f32 %v1470_v21, %v589_v13  ;;  %v670_v25 = vmax.f32 %v598_v18, 0.0 }
 0x1bc   :  { %v1158_v16 = vpop.f32.mrf.mxu1 }
 0x1bd   :  { %v601_v7 = vadd.f32 %v1158_v16, %v1470_v21  ;;  %1199 = vmatprep.mubr.bf16.mxu0 %v690_v14  ;;  %v668_v23 = vmax.f32 %v590_v17, 0.0 }
 0x1be   :  { %v592_v33 = vpop.f32.mrf.mxu1  ;;  %1200 = vmatmul.mubr.bf16.gmra.mxu0 %v691_v15 }
 0x1bf   :  { %v593_v19 = vadd.f32 %v1470_v21, %v592_v33  ;;  %v671_v20 = vmax.f32 %v601_v7, 0.0 }
 0x1c0   :  { %v1161_v22 = vpop.f32.mrf.mxu1 }
 0x1c1   :  { %v669_v24 = vmax.f32 %v593_v19, 0.0  ;;  %v693_v28 = vpack.c.bf16 %v671_v20, %v670_v25  ;;  %v614_v32 = vadd.f32 %v1161_v22, %v1470_v21 }
 0x1c2   :  { %v605_v26 = vpop.f32.mrf.mxu1 }
 0x1c3   :  { %v692_v27 = vpack.c.bf16 %v669_v24, %v668_v23  ;;  %v606_v30 = vadd.f32 %v1470_v21, %v605_v26  ;;  %v674_v41 = vmax.f32 %v614_v32, 0.0 }
 0x1c4   :  { %v1162_v29 = vpop.f32.mrf.mxu1 }
 0x1c5   :  { %v617_v31 = vadd.f32 %v1162_v29, %v1470_v21  ;;  %1203 = vmatprep.mubr.bf16.mxu0 %v692_v27  ;;  %v672_v39 = vmax.f32 %v606_v30, 0.0 }
 0x1c6   :  { %v608_v35 = vpop.f32.mrf.mxu1  ;;  %1204 = vmatmul.mubr.bf16.gmra.mxu0 %v693_v28 }
 0x1c7   :  { %v609_v36 = vadd.f32 %v1470_v21, %v608_v35  ;;  %v675_v37 = vmax.f32 %v617_v31, 0.0 }
 0x1c8   :  { %v1165_v38 = vpop.f32.mrf.mxu1 }
 0x1c9   :  { %v673_v40 = vmax.f32 %v609_v36, 0.0  ;;  %v695_v45 = vpack.c.bf16 %v675_v37, %v674_v41  ;;  %v630_v49 = vadd.f32 %v1165_v38, %v1470_v21 }
 0x1ca   :  { %v621_v43 = vpop.f32.mrf.mxu1 }
 0x1cb   :  { %v694_v44 = vpack.c.bf16 %v673_v40, %v672_v39  ;;  %v622_v47 = vadd.f32 %v1470_v21, %v621_v43  ;;  %v678_v57 = vmax.f32 %v630_v49, 0.0 }
 0x1cc   :  { %v1166_v46 = vpop.f32.mrf.mxu1 }
 0x1cd   :  { %v633_v48 = vadd.f32 %v1166_v46, %v1470_v21  ;;  %1207 = vmatprep.mubr.bf16.mxu0 %v694_v44  ;;  %v676_v55 = vmax.f32 %v622_v47, 0.0 }
 0x1ce   :  { %v624_v50 = vpop.f32.mrf.mxu1  ;;  %1208 = vmatmul.mubr.bf16.gmra.mxu0 %v695_v45 }
 0x1cf   :  { %v625_v52 = vadd.f32 %v1470_v21, %v624_v50  ;;  %v679_v53 = vmax.f32 %v633_v48, 0.0 }
 0x1d0   :  { %v1169_v54 = vpop.f32.mrf.mxu1 }
 0x1d1   :  { %v677_v56 = vmax.f32 %v625_v52, 0.0  ;;  %v697_v42 = vpack.c.bf16 %v679_v53, %v678_v57  ;;  %v646_v63 = vadd.f32 %v1169_v54, %v1470_v21 }
 0x1d2   :  { %v637_v58 = vpop.f32.mrf.mxu1 }
 0x1d3   :  { %v696_v34 = vpack.c.bf16 %v677_v56, %v676_v55  ;;  %v638_v61 = vadd.f32 %v1470_v21, %v637_v58  ;;  %v682_v5 = vmax.f32 %v646_v63, 0.0 }
 0x1d4   :  { %v1170_v59 = vpop.f32.mrf.mxu1 }
 0x1d5   :  { %v649_v62 = vadd.f32 %v1170_v59, %v1470_v21  ;;  %1211 = vmatprep.mubr.bf16.mxu0 %v696_v34  ;;  %v680_v3 = vmax.f32 %v638_v61, 0.0 }
 0x1d6   :  { %v640_v0 = vpop.f32.mrf.mxu1  ;;  %1212 = vmatmul.mubr.bf16.gmra.mxu0 %v697_v42 }
 0x1d7   :  { %v641_v1 = vadd.f32 %v1470_v21, %v640_v0  ;;  %v683_v2 = vmax.f32 %v649_v62, 0.0 }
 0x1d9   :  { %v681_v4 = vmax.f32 %v641_v1, 0.0  ;;  %v699_v6 = vpack.c.bf16 %v683_v2, %v682_v5 }
 0x1db   :  { %v698_v51 = vpack.c.bf16 %v681_v4, %v680_v3 }
 0x1dd   :  { %1215 = vmatprep.mubr.bf16.mxu0 %v698_v51 }
 0x1de   :  { %1216 = vmatmul.mubr.bf16.gmra.mxu0 %v699_v6 }
 0x266   :  { %v1189_v8 = vpop.f32.mrf.mxu0 }
 0x267   :  { %v814_v9 = vadd.f32 %v1189_v8, %v1507_v60 }
 0x268   :  { %v805_v10 = vpop.f32.mrf.mxu0 }
 0x269   :  { %934 = vst [vmem:[%s1644_s7 + $0x10] sm:$0xff] %v814_v9  ;;  %v806_v21 = vadd.f32 %v1507_v60, %v805_v10 }
 0x26a   :  { %v1190_v11 = vpop.f32.mrf.mxu0 }
 0x26b   :  { %932 = vst [vmem:[%s1644_s7] sm:$0xff] %v806_v21  ;;  %v817_v12 = vadd.f32 %v1190_v11, %v1507_v60 }
 0x26c   :  { %v808_v13 = vpop.f32.mrf.mxu0 }
 0x26d   :  { %935 = vst [vmem:[%s1644_s7 + $0x18] sm:$0xff] %v817_v12  ;;  %v809_v14 = vadd.f32 %v1507_v60, %v808_v13 }
 0x26e   :  { %v1193_v15 = vpop.f32.mrf.mxu0 }
 0x26f   :  { %933 = vst [vmem:[%s1644_s7 + $0x8] sm:$0xff] %v809_v14  ;;  %v830_v16 = vadd.f32 %v1193_v15, %v1507_v60 }
 0x270   :  { %v821_v17 = vpop.f32.mrf.mxu0 }
 0x271   :  { %938 = vst [vmem:[%s1644_s7 + $0x30] sm:$0xff] %v830_v16  ;;  %v822_v7 = vadd.f32 %v1507_v60, %v821_v17 }
 0x272   :  { %v1194_v18 = vpop.f32.mrf.mxu0 }
 0x273   :  { %936 = vst [vmem:[%s1644_s7 + $0x20] sm:$0xff] %v822_v7  ;;  %v833_v33 = vadd.f32 %v1194_v18, %v1507_v60 }
 0x274   :  { %v824_v19 = vpop.f32.mrf.mxu0 }
 0x275   :  { %939 = vst [vmem:[%s1644_s7 + $0x38] sm:$0xff] %v833_v33  ;;  %v825_v20 = vadd.f32 %v1507_v60, %v824_v19 }
 0x276   :  { %v1197_v22 = vpop.f32.mrf.mxu0 }
 0x277   :  { %937 = vst [vmem:[%s1644_s7 + $0x28] sm:$0xff] %v825_v20  ;;  %v846_v23 = vadd.f32 %v1197_v22, %v1507_v60 }
 0x278   :  { %v837_v24 = vpop.f32.mrf.mxu0 }
 0x279   :  { %942 = vst [vmem:[%s1644_s7 + $0x50] sm:$0xff] %v846_v23  ;;  %v838_v25 = vadd.f32 %v1507_v60, %v837_v24 }
 0x27a   :  { %v1198_v26 = vpop.f32.mrf.mxu0 }
 0x27b   :  { %940 = vst [vmem:[%s1644_s7 + $0x40] sm:$0xff] %v838_v25  ;;  %v849_v27 = vadd.f32 %v1198_v26, %v1507_v60 }
 0x27c   :  { %v840_v28 = vpop.f32.mrf.mxu0 }
 0x27d   :  { %943 = vst [vmem:[%s1644_s7 + $0x58] sm:$0xff] %v849_v27  ;;  %v841_v29 = vadd.f32 %v1507_v60, %v840_v28 }
 0x27e   :  { %v1201_v30 = vpop.f32.mrf.mxu0 }
 0x27f   :  { %941 = vst [vmem:[%s1644_s7 + $0x48] sm:$0xff] %v841_v29  ;;  %v862_v31 = vadd.f32 %v1201_v30, %v1507_v60 }
 0x280   :  { %v853_v32 = vpop.f32.mrf.mxu0 }
 0x281   :  { %946 = vst [vmem:[%s1644_s7 + $0x70] sm:$0xff] %v862_v31  ;;  %v854_v35 = vadd.f32 %v1507_v60, %v853_v32 }
 0x282   :  { %v1202_v36 = vpop.f32.mrf.mxu0 }
 0x283   :  { %944 = vst [vmem:[%s1644_s7 + $0x60] sm:$0xff] %v854_v35  ;;  %v865_v37 = vadd.f32 %v1202_v36, %v1507_v60 }
 0x284   :  { %v856_v38 = vpop.f32.mrf.mxu0 }
 0x285   :  { %947 = vst [vmem:[%s1644_s7 + $0x78] sm:$0xff] %v865_v37  ;;  %v857_v39 = vadd.f32 %v1507_v60, %v856_v38 }
 0x286   :  { %v1205_v40 = vpop.f32.mrf.mxu0 }
 0x287   :  { %945 = vst [vmem:[%s1644_s7 + $0x68] sm:$0xff] %v857_v39  ;;  %v878_v41 = vadd.f32 %v1205_v40, %v1507_v60 }
 0x288   :  { %v869_v43 = vpop.f32.mrf.mxu0 }
 0x289   :  { %950 = vst [vmem:[%s1644_s7 + $0x90] sm:$0xff] %v878_v41  ;;  %v870_v44 = vadd.f32 %v1507_v60, %v869_v43 }
 0x28a   :  { %v1206_v45 = vpop.f32.mrf.mxu0 }
 0x28b   :  { %948 = vst [vmem:[%s1644_s7 + $0x80] sm:$0xff] %v870_v44  ;;  %v881_v46 = vadd.f32 %v1206_v45, %v1507_v60 }
 0x28c   :  { %v872_v47 = vpop.f32.mrf.mxu0 }
 0x28d   :  { %951 = vst [vmem:[%s1644_s7 + $0x98] sm:$0xff] %v881_v46  ;;  %v873_v48 = vadd.f32 %v1507_v60, %v872_v47 }
 0x28e   :  { %v1209_v49 = vpop.f32.mrf.mxu0 }
 0x28f   :  { %949 = vst [vmem:[%s1644_s7 + $0x88] sm:$0xff] %v873_v48  ;;  %v894_v50 = vadd.f32 %v1209_v49, %v1507_v60 }
 0x290   :  { %v885_v52 = vpop.f32.mrf.mxu0 }
 0x291   :  { %954 = vst [vmem:[%s1644_s7 + $0xb0] sm:$0xff] %v894_v50  ;;  %v886_v53 = vadd.f32 %v1507_v60, %v885_v52 }
 0x292   :  { %v1210_v54 = vpop.f32.mrf.mxu0 }
 0x293   :  { %952 = vst [vmem:[%s1644_s7 + $0xa0] sm:$0xff] %v886_v53  ;;  %v897_v55 = vadd.f32 %v1210_v54, %v1507_v60 }
 0x294   :  { %v888_v56 = vpop.f32.mrf.mxu0 }
 0x295   :  { %955 = vst [vmem:[%s1644_s7 + $0xb8] sm:$0xff] %v897_v55  ;;  %v889_v57 = vadd.f32 %v1507_v60, %v888_v56 }
 0x296   :  { %v1213_v58 = vpop.f32.mrf.mxu0 }
 0x297   :  { %953 = vst [vmem:[%s1644_s7 + $0xa8] sm:$0xff] %v889_v57  ;;  %v910_v34 = vadd.f32 %v1213_v58, %v1507_v60 }
 0x298   :  { %v901_v42 = vpop.f32.mrf.mxu0 }
 0x299   :  { %958 = vst [vmem:[%s1644_s7 + $0xd0] sm:$0xff] %v910_v34  ;;  %v902_v59 = vadd.f32 %v1507_v60, %v901_v42 }
 0x29a   :  { %v1214_v61 = vpop.f32.mrf.mxu0 }
 0x29b   :  { %956 = vst [vmem:[%s1644_s7 + $0xc0] sm:$0xff] %v902_v59  ;;  %v913_v62 = vadd.f32 %v1214_v61, %v1507_v60 }
 0x29c   :  { %v904_v63 = vpop.f32.mrf.mxu0 }
 0x29d   :  { %959 = vst [vmem:[%s1644_s7 + $0xd8] sm:$0xff] %v913_v62  ;;  %v905_v0 = vadd.f32 %v1507_v60, %v904_v63 }
 0x29e   :  { %v1217_v1 = vpop.f32.mrf.mxu0 }
 0x29f   :  { %957 = vst [vmem:[%s1644_s7 + $0xc8] sm:$0xff] %v905_v0  ;;  %v926_v2 = vadd.f32 %v1217_v1, %v1507_v60 }
 0x2a0   :  { %v917_v3 = vpop.f32.mrf.mxu0 }
 0x2a1   :  { %962 = vst [vmem:[%s1644_s7 + $0xf0] sm:$0xff] %v926_v2  ;;  %v918_v4 = vadd.f32 %v1507_v60, %v917_v3 }
 0x2a2   :  { %v1218_v5 = vpop.f32.mrf.mxu0 }
 0x2a3   :  { %960 = vst [vmem:[%s1644_s7 + $0xe0] sm:$0xff] %v918_v4  ;;  %v929_v51 = vadd.f32 %v1218_v5, %v1507_v60 }
 0x2a4   :  { %v920_v6 = vpop.f32.mrf.mxu0 }
 0x2a5   :  { %963 = vst [vmem:[%s1644_s7 + $0xf8] sm:$0xff] %v929_v51  ;;  %v921_v8 = vadd.f32 %v1507_v60, %v920_v6 }
 0x2a7   :  { %961 = vst [vmem:[%s1644_s7 + $0xe8] sm:$0xff] %v921_v8 }

</bundles_post_ra>
